<compile_context>
chip_gen: v5e
topology: v5e:2x2
jax: 0.10.0
libtpu: 0.0.40
codegen_flags: <defaults>
</compile_context>

<pallas_src>
import functools

import numpy as np
import jax
import jax.numpy as jnp
from jax.experimental import pallas as pl
from jax.experimental.pallas import tpu as pltpu


# ----------------------------------------------------------------------------
# Parameter setup (deterministic numpy; identical to the PyTorch module)
# ----------------------------------------------------------------------------
def _get_1d_sincos_pos_embed_from_grid(embed_dim, pos):
    assert embed_dim % 2 == 0
    omega = np.arange(embed_dim // 2, dtype=np.float64)
    omega /= embed_dim / 2.0
    omega = 1.0 / 10000 ** omega
    pos = pos.reshape(-1)
    out = np.einsum("m,d->md", pos, omega)
    return np.concatenate([np.sin(out), np.cos(out)], axis=1)


def get_2d_sincos_pos_embed(embed_dim, grid_size, cls_token=False):
    assert embed_dim % 2 == 0
    grid_h = np.arange(grid_size, dtype=np.float32)
    grid_w = np.arange(grid_size, dtype=np.float32)
    grid = np.meshgrid(grid_w, grid_h)
    grid = np.stack(grid, axis=0).reshape([2, 1, grid_size, grid_size])
    emb_h = _get_1d_sincos_pos_embed_from_grid(embed_dim // 2, grid[0])
    emb_w = _get_1d_sincos_pos_embed_from_grid(embed_dim // 2, grid[1])
    pos_embed = np.concatenate([emb_h, emb_w], axis=1)
    if cls_token:
        pos_embed = np.concatenate([np.zeros([1, embed_dim]), pos_embed], axis=0)
    return pos_embed.astype(np.float32)  # torch .float() cast


# ----------------------------------------------------------------------------
# Trace-time hardware queries (shapes/limits are static under jit)
# ----------------------------------------------------------------------------
def _num_tensorcores():
    """Best-effort TensorCores-per-chip count; conservative default of 1."""
    try:
        info = pltpu.get_tpu_info()
        for attr in ("num_cores", "core_count", "num_tensorcores", "tensor_core_count"):
            v = getattr(info, attr, None)
            if isinstance(v, int) and v >= 1:
                return min(v, 2)  # at most 2 TCs per chip on current generations
    except Exception:
        pass
    return 1


def _vmem_limits():
    """(vmem_limit_bytes, block_budget_bytes) derived from physical VMEM."""
    cap = None
    try:
        cap = pltpu.get_tpu_info().vmem_capacity_bytes
    except Exception:
        cap = None
    if not cap:
        cap = 64 * 1024 * 1024                           # assume smallest (v7x) VMEM
    limit = min((int(cap) * 3) // 4, 96 * 1024 * 1024)   # ~48 MiB v7x, ~96 MiB v5e/v6e
    budget = max(limit - 8 * 1024 * 1024, 4 * 1024 * 1024)  # headroom: pos blocks, scratch
    return int(limit), int(budget)


def _choose_bb(B, HW, C, itemsize, num_cores, block_budget):
    """Largest bb dividing B whose double-buffered in/out blocks fit the budget.

    Single-TC chips may use a single grid step (whole tensor in one block);
    multi-TC chips keep at least `num_cores` steps so every core gets work.
    """
    min_steps = num_cores if B >= num_cores else 1
    best = 1
    for bb in range(1, B + 1):
        if B % bb:
            continue
        if B // bb < min_steps:
            continue
        if 4 * bb * HW * C * itemsize <= block_budget:
            best = bb
    return best


# ----------------------------------------------------------------------------
# Pallas kernels: broadcast-add of the positional embedding rows
# ----------------------------------------------------------------------------
def _add_kernel_blocked_pos(x_ref, pos_ref, o_ref):
    # x_ref / o_ref: (bb, H*W, C); pos_ref: (bb, C) -- exactly this step's rows.
    o_ref[...] = x_ref[...] + pos_ref[...][:, None, :]


def _add_kernel_resident_pos(x_ref, pos_ref, o_ref, *, bb):
    # Fallback path: pos_ref is the full (B, C) table, resident in VMEM.
    start = pl.multiple_of(pl.program_id(0) * bb, bb)
    o_ref[...] = x_ref[...] + pos_ref[pl.ds(start, bb), :][:, None, :]


def _sincos_forward_impl(x, pos_embed):
    B, H, W, C = x.shape
    if pos_embed.shape != (B, C):
        raise ValueError(
            f"pos_embed shape {pos_embed.shape} must equal (B, C) = ({B}, {C}); "
            "the leading batch axis of x must equal grid_size**2 and C must equal "
            "embed_dim (the cls_token=True variant with B+1 rows is not supported "
            "by this forward)."
        )
    HW = H * W
    pos_embed = pos_embed.astype(x.dtype)

    num_cores = _num_tensorcores()
    vmem_limit, block_budget = _vmem_limits()
    itemsize = jnp.dtype(x.dtype).itemsize
    bb = _choose_bb(B, HW, C, itemsize, num_cores, block_budget)
    steps = B // bb

    x3 = x.reshape(B, HW, C)  # metadata-only under jit; the add itself is in the kernel

    if bb == B or bb % 8 == 0:
        kernel = _add_kernel_blocked_pos
        pos_spec = pl.BlockSpec((bb, C), lambda b: (b, 0))      # per-step rows, streamed
    else:
        # bb would be an awkward sublane tile for the 2-D pos table; keep the tiny
        # full table resident instead and slice the bb rows inside the kernel.
        kernel = functools.partial(_add_kernel_resident_pos, bb=bb)
        pos_spec = pl.BlockSpec((B, C), lambda b: (0, 0))

    out3 = pl.pallas_call(
        kernel,
        out_shape=jax.ShapeDtypeStruct((B, HW, C), x.dtype),
        grid=(steps,),
        in_specs=[
            pl.BlockSpec((bb, HW, C), lambda b: (b, 0, 0)),     # activations, streamed
            pos_spec,                                           # embedding rows
        ],
        out_specs=pl.BlockSpec((bb, HW, C), lambda b: (b, 0, 0)),
        input_output_aliases={0: 0},   # in-place add (x is donated at the jit level)
        compiler_params=pltpu.CompilerParams(
            dimension_semantics=("parallel",),
            vmem_limit_bytes=vmem_limit,
        ),
    )(x3, pos_embed)

    return out3.reshape(B, H, W, C)


# x is donated so input_output_aliases={0: 0} actually avoids a defensive copy;
# callers must NOT reuse x after this call.
sincos_forward = jax.jit(_sincos_forward_impl, donate_argnums=(0,))


# ----------------------------------------------------------------------------
# Demo / self-check
# ----------------------------------------------------------------------------
if __name__ == "__main__":
    embed_dim = 128            # lane-dense demo size (module default is 512)
    grid_size = 8              # hard-coded in SINCOS.__init__
    B = grid_size * grid_size  # 64 -- leading axis of x lines up with grid positions
    H, W, C = 4, 4, embed_dim  # H*W = 16 (multiple of 8) -> dense sublane tiles

    pos_embed = jnp.asarray(get_2d_sincos_pos_embed(embed_dim, grid_size))  # (64, C)

    key = jax.random.PRNGKey(0)
    x = jax.random.normal(key, (B, H, W, C), dtype=jnp.float32)

    # Host-side reference of the PyTorch forward, computed BEFORE the kernel call
    # because x is donated (its device buffer is reused for the output).
    x_np = np.asarray(x)
    pos_np = np.asarray(pos_embed)
    ref = x_np + pos_np[:, None, None, :]

    out = sincos_forward(x, pos_embed)
    out = jax.block_until_ready(out)

    assert out.shape == (B, H, W, C)
    assert out.dtype == jnp.float32
    np.testing.assert_allclose(np.asarray(out), ref, rtol=1e-6, atol=1e-6)

    print("KERNEL_OK")
</pallas_src>

<mosaic_0001>
module attributes {stable_mosaic.version = 11 : i64} {
  func.func @_add_kernel_blocked_pos(%arg0: i32, %arg1: memref<64x16x128xf32, #tpu.memory_space<vmem>>, %arg2: memref<64x128xf32, #tpu.memory_space<vmem>>, %arg3: memref<64x16x128xf32, #tpu.memory_space<vmem>>) attributes {dimension_semantics = [#tpu.dimension_semantics<parallel>], iteration_bounds = array<i64: 1>, scalar_prefetch = 0 : i64, scratch_operands = 0 : i64, tpu.core_type = #tpu.core_type<tc>, window_params = [{transform_indices = @transform_0, window_bounds = array<i64: 64, 16, 128>}, {transform_indices = @transform_1, window_bounds = array<i64: 64, 128>}, {transform_indices = @transform_2, window_bounds = array<i64: 64, 16, 128>}]} {
    %c0 = arith.constant 0 : index
    %c0_0 = arith.constant 0 : index
    %c0_1 = arith.constant 0 : index
    %0 = vector.load %arg1[%c0, %c0_0, %c0_1] : memref<64x16x128xf32, #tpu.memory_space<vmem>>, vector<64x16x128xf32>
    %c0_2 = arith.constant 0 : index
    %c0_3 = arith.constant 0 : index
    %1 = vector.load %arg2[%c0_2, %c0_3] : memref<64x128xf32, #tpu.memory_space<vmem>>, vector<64x128xf32>
    %2 = vector.shape_cast %1 : vector<64x128xf32> to vector<64x1x128xf32>
    %3 = vector.broadcast %2 : vector<64x1x128xf32> to vector<64x16x128xf32>
    %4 = arith.addf %0, %3 : vector<64x16x128xf32>
    %c0_4 = arith.constant 0 : index
    %c0_5 = arith.constant 0 : index
    %c0_6 = arith.constant 0 : index
    %5 = vector.load %arg3[%c0_4, %c0_5, %c0_6] : memref<64x16x128xf32, #tpu.memory_space<vmem>>, vector<64x16x128xf32>
    tpu.vector_store %arg3[%c0_4, %c0_5, %c0_6], %4 {strides = array<i32>} : memref<64x16x128xf32, #tpu.memory_space<vmem>>, vector<64x16x128xf32>,
    return
  }
  func.func @transform_0(%arg0: i32) -> (i32, i32, i32) {
    %c0_i32 = arith.constant 0 : i32
    %c0_i32_0 = arith.constant 0 : i32
    %c0_i32_1 = arith.constant 0 : i32
    return %arg0, %c0_i32, %c0_i32_0 : i32, i32, i32
  }
  func.func @transform_1(%arg0: i32) -> (i32, i32) {
    %c0_i32 = arith.constant 0 : i32
    %c0_i32_0 = arith.constant 0 : i32
    return %arg0, %c0_i32 : i32, i32
  }
  func.func @transform_2(%arg0: i32) -> (i32, i32, i32) {
    %c0_i32 = arith.constant 0 : i32
    %c0_i32_0 = arith.constant 0 : i32
    %c0_i32_1 = arith.constant 0 : i32
    return %arg0, %c0_i32, %c0_i32_0 : i32, i32, i32
  }
}

</mosaic_0001>

<bundles_post_ra>
// kernel: _sincos_forward_impl.1
= control target key start
LH: loop header
LB: loop body
LE: loop exit
PB: predicated region body
PF: predicated region fallthrough
CT: control target
= control target key end

     0   :  { %7 = vsyncpa [#allocation3], 0  ;;  %s839_s0 = inlined_call_operand.hbm [shape: f32[64,16,128], index: 0, kind: input, shape index: {}, may-alias: {0,2}]   ;;  %s840_s1 = inlined_call_operand.hbm [shape: f32[64,128], index: 1, kind: input, shape index: {}]   ;;  %s841_s2 = inlined_call_operand.hbm [shape: f32[64,16,128], index: 2, kind: output, shape index: {}, may-alias: {0,2}]  }
   0x1   :  { %8 = vsyncpa [#allocation6], 0 }
   0x2   :  { %9 = vsyncpa [#allocation4], 0  ;;  %s14_s11 = sshll.u32 %s839_s0, 4  ;;  %s731_s12 = smov [#allocation2]   ;;  %s15_s11 = int_to_ptr.hbm [resolvable:$true] %s14_s11 }
   0x3   :  { %s16_s13 = sshll.u32 %s731_s12, 4  ;;  %s27_s16 = sshll.u32 %s840_s1, 4  ;;  %s17_s13 = int_to_ptr.vmem [resolvable:$true] %s16_s13  ;;  %s28_s16 = int_to_ptr.hbm [resolvable:$true] %s27_s16 }
   0x4   :  { %s732_s17 = smov 128   ;;  %s733_s18 = smov 8  }
   0x5   :  { %22 = dma.hbm_to_vmem [thread:$0]  %s15_s11, 16384, %s17_s13, [#allocation3], %s732_s17, %s732_s17, %s733_s18  }
   0x6   :  { %s734_s19 = smov [#allocation5]  }
   0x7   :  { %s29_s20 = sshll.u32 %s734_s19, 4  ;;  %s30_s20 = int_to_ptr.vmem [resolvable:$true] %s29_s20 }
   0x8   :  { %35 = dma.hbm_to_vmem [thread:$0]  %s28_s16, 1024, %s30_s20, [#allocation6], %s732_s17, %s732_s17, %s733_s18  }
   0x9   :  { %725 = dma.done.wait [#allocation3], 16384  }
   0xa   :  { %726 = vsyncadd [#allocation3], 4294950912 }
   0xb   :  { %727 = dma.done.wait [#allocation6], 1024  }
   0xc   :  { %728 = vsyncadd [#allocation6], 4294966272  ;;  %v44_v0 = vld [vmem:[#allocation2] sm:$0xff]  ;;  %v45_v2 = vld [vmem:[#allocation2 + $0x8] sm:$0xff]  ;;  %s735_s0 = smov [#allocation7]   ;;  %s634_s23 = sshll.u32 %s841_s2, 4  ;;  %s635_s23 = int_to_ptr.hbm [resolvable:$true] %s634_s23 }
   0xd   :  { %v172_v1 = vld [vmem:[#allocation5] sm:$0xff]  ;;  %v46_v6 = vld [vmem:[#allocation2 + $0x10] sm:$0xff]  ;;  %v47_v7 = vld [vmem:[#allocation2 + $0x18] sm:$0xff]  ;;  %s632_s1 = sshll.u32 %s735_s0, 4  ;;  %s633_s1 = int_to_ptr.vmem [resolvable:$true] %s632_s1 }
   0xe   :  { %v244_v3 = vperm.slane %v172_v1, 0  ;;  %v188_v4 = vrot.slane %v172_v1, 1  ;;  %v189_v5 = vrot.slane %v172_v1, 2  ;;  %v48_v8 = vld [vmem:[#allocation2 + $0x20] sm:$0xff]  ;;  %v190_v9 = vrot.slane %v172_v1, 3  ;;  %v49_v16 = vld [vmem:[#allocation2 + $0x28] sm:$0xff] }
   0xf   :  { %v191_v10 = vrot.slane %v172_v1, 4  ;;  %v192_v11 = vrot.slane %v172_v1, 5  ;;  %v50_v17 = vld [vmem:[#allocation2 + $0x30] sm:$0xff]  ;;  %v51_v23 = vld [vmem:[#allocation2 + $0x38] sm:$0xff]  ;;  %v193_v24 = vrot.slane %v172_v1, 6  ;;  %v52_v26 = vld [vmem:[#allocation2 + $0x40] sm:$0xff] }
  0x10   :  { %v372_v12 = vadd.f32 %v244_v3, %v44_v0  ;;  %v373_v13 = vadd.f32 %v244_v3, %v45_v2  ;;  %v245_v14 = vperm.slane %v188_v4, 0  ;;  %v246_v15 = vperm.slane %v189_v5, 0  ;;  %v53_v28 = vld [vmem:[#allocation2 + $0x48] sm:$0xff]  ;;  %v54_v32 = vld [vmem:[#allocation2 + $0x50] sm:$0xff]  ;;  %v55_v35 = vld [vmem:[#allocation2 + $0x58] sm:$0xff] }
  0x11   :  { %v247_v18 = vperm.slane %v190_v9, 0  ;;  %v248_v19 = vperm.slane %v191_v10, 0  ;;  %v249_v29 = vperm.slane %v192_v11, 0  ;;  %v194_v30 = vrot.slane %v172_v1, 7  ;;  %v763_v33 = vld [vmem:[#allocation5 + $0x8] sm:$0xff]  ;;  %v56_v38 = vld [vmem:[#allocation2 + $0x60] sm:$0xff] }
  0x12   :  { %500 = vst [vmem:[#allocation7] sm:$0xff] %v372_v12  ;;  %v374_v20 = vadd.f32 %v245_v14, %v46_v6  ;;  %v375_v21 = vadd.f32 %v245_v14, %v47_v7  ;;  %v376_v22 = vadd.f32 %v246_v15, %v48_v8  ;;  %v377_v25 = vadd.f32 %v246_v15, %v49_v16  ;;  %v57_v40 = vld [vmem:[#allocation2 + $0x68] sm:$0xff]  ;;  %v58_v44 = vld [vmem:[#allocation2 + $0x70] sm:$0xff]  ;;  %v59_v46 = vld [vmem:[#allocation2 + $0x78] sm:$0xff] }
  0x13   :  { %501 = vst [vmem:[#allocation7 + $0x8] sm:$0xff] %v373_v13  ;;  %v378_v27 = vadd.f32 %v247_v18, %v50_v17  ;;  %v379_v31 = vadd.f32 %v247_v18, %v51_v23  ;;  %v380_v34 = vadd.f32 %v248_v19, %v52_v26  ;;  %v250_v36 = vperm.slane %v193_v24, 0  ;;  %v60_v50 = vld [vmem:[#allocation2 + $0x80] sm:$0xff]  ;;  %v61_v52 = vld [vmem:[#allocation2 + $0x88] sm:$0xff]  ;;  %v62_v56 = vld [vmem:[#allocation2 + $0x90] sm:$0xff] }
  0x14   :  { %502 = vst [vmem:[#allocation7 + $0x10] sm:$0xff] %v374_v20  ;;  %v381_v37 = vadd.f32 %v248_v19, %v53_v28  ;;  %v382_v39 = vadd.f32 %v249_v29, %v54_v32  ;;  %v251_v41 = vperm.slane %v194_v30, 0  ;;  %v195_v42 = vrot.slane %v763_v33, 1  ;;  %v63_v58 = vld [vmem:[#allocation2 + $0x98] sm:$0xff]  ;;  %v64_v62 = vld [vmem:[#allocation2 + $0xa0] sm:$0xff]  ;;  %v65_v0 = vld [vmem:[#allocation2 + $0xa8] sm:$0xff] }
  0x15   :  { %503 = vst [vmem:[#allocation7 + $0x18] sm:$0xff] %v375_v21  ;;  %v383_v43 = vadd.f32 %v249_v29, %v55_v35  ;;  %v384_v45 = vadd.f32 %v250_v36, %v56_v38  ;;  %v252_v47 = vperm.slane %v763_v33, 0  ;;  %v196_v48 = vrot.slane %v763_v33, 2  ;;  %v66_v4 = vld [vmem:[#allocation2 + $0xb0] sm:$0xff]  ;;  %v67_v6 = vld [vmem:[#allocation2 + $0xb8] sm:$0xff]  ;;  %v68_v10 = vld [vmem:[#allocation2 + $0xc0] sm:$0xff] }
  0x16   :  { %504 = vst [vmem:[#allocation7 + $0x20] sm:$0xff] %v376_v22  ;;  %v385_v49 = vadd.f32 %v250_v36, %v57_v40  ;;  %v386_v51 = vadd.f32 %v251_v41, %v58_v44  ;;  %v253_v53 = vperm.slane %v195_v42, 0  ;;  %v197_v54 = vrot.slane %v763_v33, 3  ;;  %v69_v12 = vld [vmem:[#allocation2 + $0xc8] sm:$0xff]  ;;  %v70_v16 = vld [vmem:[#allocation2 + $0xd0] sm:$0xff]  ;;  %v71_v19 = vld [vmem:[#allocation2 + $0xd8] sm:$0xff] }
  0x17   :  { %505 = vst [vmem:[#allocation7 + $0x28] sm:$0xff] %v377_v25  ;;  %v387_v55 = vadd.f32 %v251_v41, %v59_v46  ;;  %v388_v57 = vadd.f32 %v252_v47, %v60_v50  ;;  %v254_v59 = vperm.slane %v196_v48, 0  ;;  %v198_v60 = vrot.slane %v763_v33, 4  ;;  %v773_v17 = vld [vmem:[#allocation5 + $0x10] sm:$0xff]  ;;  %v72_v22 = vld [vmem:[#allocation2 + $0xe0] sm:$0xff]  ;;  %v73_v24 = vld [vmem:[#allocation2 + $0xe8] sm:$0xff] }
  0x18   :  { %506 = vst [vmem:[#allocation7 + $0x30] sm:$0xff] %v378_v27  ;;  %v389_v61 = vadd.f32 %v252_v47, %v61_v52  ;;  %v390_v63 = vadd.f32 %v253_v53, %v62_v56  ;;  %v255_v1 = vperm.slane %v197_v54, 0  ;;  %v199_v2 = vrot.slane %v763_v33, 5  ;;  %v74_v28 = vld [vmem:[#allocation2 + $0xf0] sm:$0xff]  ;;  %v75_v30 = vld [vmem:[#allocation2 + $0xf8] sm:$0xff]  ;;  %v77_v36 = vld [vmem:[#allocation2 + $0x108] sm:$0xff] }
  0x19   :  { %507 = vst [vmem:[#allocation7 + $0x38] sm:$0xff] %v379_v31  ;;  %v391_v3 = vadd.f32 %v253_v53, %v63_v58  ;;  %v392_v5 = vadd.f32 %v254_v59, %v64_v62  ;;  %v256_v7 = vperm.slane %v198_v60, 0  ;;  %v200_v8 = vrot.slane %v763_v33, 6  ;;  %v78_v40 = vld [vmem:[#allocation2 + $0x110] sm:$0xff]  ;;  %v79_v42 = vld [vmem:[#allocation2 + $0x118] sm:$0xff]  ;;  %v80_v46 = vld [vmem:[#allocation2 + $0x120] sm:$0xff] }
  0x1a   :  { %508 = vst [vmem:[#allocation7 + $0x40] sm:$0xff] %v380_v34  ;;  %v393_v9 = vadd.f32 %v254_v59, %v65_v0  ;;  %v394_v11 = vadd.f32 %v255_v1, %v66_v4  ;;  %v257_v13 = vperm.slane %v199_v2, 0  ;;  %v201_v14 = vrot.slane %v763_v33, 7  ;;  %v76_v34 = vld [vmem:[#allocation2 + $0x100] sm:$0xff]  ;;  %v81_v48 = vld [vmem:[#allocation2 + $0x128] sm:$0xff]  ;;  %v82_v52 = vld [vmem:[#allocation2 + $0x130] sm:$0xff] }
  0x1b   :  { %509 = vst [vmem:[#allocation7 + $0x48] sm:$0xff] %v381_v37  ;;  %v395_v15 = vadd.f32 %v255_v1, %v67_v6  ;;  %v396_v18 = vadd.f32 %v256_v7, %v68_v10  ;;  %v258_v20 = vperm.slane %v200_v8, 0  ;;  %v397_v21 = vadd.f32 %v256_v7, %v69_v12  ;;  %v83_v54 = vld [vmem:[#allocation2 + $0x138] sm:$0xff]  ;;  %v84_v58 = vld [vmem:[#allocation2 + $0x140] sm:$0xff]  ;;  %v85_v60 = vld [vmem:[#allocation2 + $0x148] sm:$0xff] }
  0x1c   :  { %510 = vst [vmem:[#allocation7 + $0x50] sm:$0xff] %v382_v39  ;;  %v398_v23 = vadd.f32 %v257_v13, %v70_v16  ;;  %v259_v25 = vperm.slane %v201_v14, 0  ;;  %v202_v26 = vrot.slane %v773_v17, 1  ;;  %v399_v27 = vadd.f32 %v257_v13, %v71_v19  ;;  %v86_v0 = vld [vmem:[#allocation2 + $0x150] sm:$0xff]  ;;  %v783_v1 = vld [vmem:[#allocation5 + $0x18] sm:$0xff]  ;;  %v88_v6 = vld [vmem:[#allocation2 + $0x160] sm:$0xff] }
  0x1d   :  { %511 = vst [vmem:[#allocation7 + $0x58] sm:$0xff] %v383_v43  ;;  %v400_v29 = vadd.f32 %v258_v20, %v72_v22  ;;  %v260_v31 = vperm.slane %v773_v17, 0  ;;  %v203_v32 = vrot.slane %v773_v17, 2  ;;  %v401_v33 = vadd.f32 %v258_v20, %v73_v24  ;;  %v89_v8 = vld [vmem:[#allocation2 + $0x168] sm:$0xff]  ;;  %v90_v12 = vld [vmem:[#allocation2 + $0x170] sm:$0xff]  ;;  %v91_v14 = vld [vmem:[#allocation2 + $0x178] sm:$0xff] }
  0x1e   :  { %512 = vst [vmem:[#allocation7 + $0x60] sm:$0xff] %v384_v45  ;;  %v402_v35 = vadd.f32 %v259_v25, %v74_v28  ;;  %v261_v37 = vperm.slane %v202_v26, 0  ;;  %v204_v38 = vrot.slane %v773_v17, 3  ;;  %v403_v39 = vadd.f32 %v259_v25, %v75_v30  ;;  %v93_v20 = vld [vmem:[#allocation2 + $0x188] sm:$0xff]  ;;  %v94_v24 = vld [vmem:[#allocation2 + $0x190] sm:$0xff]  ;;  %v95_v26 = vld [vmem:[#allocation2 + $0x198] sm:$0xff] }
  0x1f   :  { %513 = vst [vmem:[#allocation7 + $0x68] sm:$0xff] %v385_v49  ;;  %v404_v41 = vadd.f32 %v260_v31, %v76_v34  ;;  %v262_v43 = vperm.slane %v203_v32, 0  ;;  %v205_v44 = vrot.slane %v773_v17, 4  ;;  %v405_v45 = vadd.f32 %v260_v31, %v77_v36  ;;  %v96_v30 = vld [vmem:[#allocation2 + $0x1a0] sm:$0xff]  ;;  %v97_v32 = vld [vmem:[#allocation2 + $0x1a8] sm:$0xff]  ;;  %v98_v36 = vld [vmem:[#allocation2 + $0x1b0] sm:$0xff] }
  0x20   :  { %514 = vst [vmem:[#allocation7 + $0x70] sm:$0xff] %v386_v51  ;;  %v406_v47 = vadd.f32 %v261_v37, %v78_v40  ;;  %v263_v49 = vperm.slane %v204_v38, 0  ;;  %v206_v50 = vrot.slane %v773_v17, 5  ;;  %v407_v51 = vadd.f32 %v261_v37, %v79_v42  ;;  %v99_v38 = vld [vmem:[#allocation2 + $0x1b8] sm:$0xff]  ;;  %v100_v42 = vld [vmem:[#allocation2 + $0x1c0] sm:$0xff] }
  0x21   :  { %515 = vst [vmem:[#allocation7 + $0x78] sm:$0xff] %v387_v55  ;;  %v408_v53 = vadd.f32 %v262_v43, %v80_v46  ;;  %v264_v55 = vperm.slane %v205_v44, 0  ;;  %v207_v56 = vrot.slane %v773_v17, 6  ;;  %v208_v62 = vrot.slane %v773_v17, 7  ;;  %v101_v44 = vld [vmem:[#allocation2 + $0x1c8] sm:$0xff] }
  0x22   :  { %516 = vst [vmem:[#allocation7 + $0x80] sm:$0xff] %v388_v57  ;;  %v409_v57 = vadd.f32 %v262_v43, %v81_v48  ;;  %v410_v59 = vadd.f32 %v263_v49, %v82_v52  ;;  %v209_v10 = vrot.slane %v783_v1, 1  ;;  %v210_v16 = vrot.slane %v783_v1, 2  ;;  %v102_v48 = vld [vmem:[#allocation2 + $0x1d0] sm:$0xff] }
  0x23   :  { %517 = vst [vmem:[#allocation7 + $0x88] sm:$0xff] %v389_v61  ;;  %v265_v61 = vperm.slane %v206_v50, 0  ;;  %v412_v2 = vadd.f32 %v264_v55, %v84_v58  ;;  %v266_v4 = vperm.slane %v207_v56, 0  ;;  %v211_v22 = vrot.slane %v783_v1, 3  ;;  %v105_v56 = vld [vmem:[#allocation2 + $0x1e8] sm:$0xff] }
  0x24   :  { %518 = vst [vmem:[#allocation7 + $0x90] sm:$0xff] %v390_v63  ;;  %v411_v63 = vadd.f32 %v263_v49, %v83_v54  ;;  %v212_v28 = vrot.slane %v783_v1, 4  ;;  %v213_v34 = vrot.slane %v783_v1, 5  ;;  %v214_v40 = vrot.slane %v783_v1, 6  ;;  %v793_v49 = vld [vmem:[#allocation5 + $0x20] sm:$0xff] }
  0x25   :  { %519 = vst [vmem:[#allocation7 + $0x98] sm:$0xff] %v391_v3  ;;  %v87_v3 = vld [vmem:[#allocation2 + $0x158] sm:$0xff]  ;;  %v414_v7 = vadd.f32 %v265_v61, %v86_v0  ;;  %v416_v13 = vadd.f32 %v266_v4, %v88_v6  ;;  %v417_v17 = vadd.f32 %v266_v4, %v89_v8  ;;  %v215_v46 = vrot.slane %v783_v1, 7  ;;  %v104_v54 = vld [vmem:[#allocation2 + $0x1e0] sm:$0xff]  ;;  %v109_v4 = vld [vmem:[#allocation2 + $0x208] sm:$0xff] }
  0x26   :  { %520 = vst [vmem:[#allocation7 + $0xa0] sm:$0xff] %v392_v5  ;;  %v413_v5 = vadd.f32 %v264_v55, %v85_v60  ;;  %v274_v52 = vperm.slane %v214_v40, 0  ;;  %v216_v58 = vrot.slane %v793_v49, 1  ;;  %v106_v60 = vld [vmem:[#allocation2 + $0x1f0] sm:$0xff]  ;;  %v217_v0 = vrot.slane %v793_v49, 2  ;;  %v121_v40 = vld [vmem:[#allocation2 + $0x268] sm:$0xff] }
  0x27   :  { %521 = vst [vmem:[#allocation7 + $0xa8] sm:$0xff] %v393_v9  ;;  %v267_v9 = vperm.slane %v208_v62, 0  ;;  %v107_v62 = vld [vmem:[#allocation2 + $0x1f8] sm:$0xff]  ;;  %v218_v6 = vrot.slane %v793_v49, 3  ;;  %v110_v8 = vld [vmem:[#allocation2 + $0x210] sm:$0xff] }
  0x28   :  { %522 = vst [vmem:[#allocation7 + $0xb0] sm:$0xff] %v394_v11  ;;  %v415_v11 = vadd.f32 %v265_v61, %v87_v3  ;;  %v432_v61 = vadd.f32 %v274_v52, %v104_v54 }
  0x29   :  { %523 = vst [vmem:[#allocation7 + $0xb8] sm:$0xff] %v395_v15  ;;  %v268_v15 = vperm.slane %v783_v1, 0  ;;  %v418_v19 = vadd.f32 %v267_v9, %v90_v12  ;;  %v433_v1 = vadd.f32 %v274_v52, %v105_v56  ;;  %v219_v12 = vrot.slane %v793_v49, 4  ;;  %v125_v52 = vld [vmem:[#allocation2 + $0x288] sm:$0xff]  ;;  %v126_v56 = vld [vmem:[#allocation2 + $0x290] sm:$0xff] }
  0x2a   :  { %524 = vst [vmem:[#allocation7 + $0xc0] sm:$0xff] %v396_v18  ;;  %v92_v18 = vld [vmem:[#allocation2 + $0x180] sm:$0xff] }
  0x2b   :  { %525 = vst [vmem:[#allocation7 + $0xc8] sm:$0xff] %v397_v21  ;;  %v269_v21 = vperm.slane %v209_v10, 0  ;;  %v420_v25 = vadd.f32 %v268_v15, %v92_v18  ;;  %v111_v10 = vld [vmem:[#allocation2 + $0x218] sm:$0xff]  ;;  %v220_v18 = vrot.slane %v793_v49, 5 }
  0x2c   :  { %526 = vst [vmem:[#allocation7 + $0xd0] sm:$0xff] %v398_v23  ;;  %v419_v23 = vadd.f32 %v267_v9, %v91_v14  ;;  %v112_v14 = vld [vmem:[#allocation2 + $0x220] sm:$0xff] }
  0x2d   :  { %527 = vst [vmem:[#allocation7 + $0xd8] sm:$0xff] %v399_v27  ;;  %v270_v27 = vperm.slane %v210_v16, 0  ;;  %v422_v31 = vadd.f32 %v269_v21, %v94_v24  ;;  %v113_v16 = vld [vmem:[#allocation2 + $0x228] sm:$0xff]  ;;  %v221_v24 = vrot.slane %v793_v49, 6 }
  0x2e   :  { %528 = vst [vmem:[#allocation7 + $0xe0] sm:$0xff] %v400_v29  ;;  %v421_v29 = vadd.f32 %v268_v15, %v93_v20  ;;  %v114_v20 = vld [vmem:[#allocation2 + $0x230] sm:$0xff] }
  0x2f   :  { %529 = vst [vmem:[#allocation7 + $0xe8] sm:$0xff] %v401_v33  ;;  %v271_v33 = vperm.slane %v211_v22, 0  ;;  %v424_v37 = vadd.f32 %v270_v27, %v96_v30  ;;  %v115_v22 = vld [vmem:[#allocation2 + $0x238] sm:$0xff]  ;;  %v222_v30 = vrot.slane %v793_v49, 7 }
  0x30   :  { %530 = vst [vmem:[#allocation7 + $0xf0] sm:$0xff] %v402_v35  ;;  %v423_v35 = vadd.f32 %v269_v21, %v95_v26  ;;  %v116_v26 = vld [vmem:[#allocation2 + $0x240] sm:$0xff] }
  0x31   :  { %531 = vst [vmem:[#allocation7 + $0xf8] sm:$0xff] %v403_v39  ;;  %v272_v39 = vperm.slane %v212_v28, 0  ;;  %v426_v43 = vadd.f32 %v271_v33, %v98_v36  ;;  %v117_v28 = vld [vmem:[#allocation2 + $0x248] sm:$0xff]  ;;  %v282_v36 = vperm.slane %v221_v24, 0 }
  0x32   :  { %532 = vst [vmem:[#allocation7 + $0x100] sm:$0xff] %v404_v41  ;;  %v425_v41 = vadd.f32 %v270_v27, %v97_v32  ;;  %v118_v32 = vld [vmem:[#allocation2 + $0x250] sm:$0xff]  ;;  %v137_v24 = vld [vmem:[#allocation2 + $0x2e8] sm:$0xff] }
  0x33   :  { %533 = vst [vmem:[#allocation7 + $0x108] sm:$0xff] %v405_v45  ;;  %v273_v45 = vperm.slane %v213_v34, 0  ;;  %v428_v50 = vadd.f32 %v272_v39, %v100_v42 }
  0x34   :  { %534 = vst [vmem:[#allocation7 + $0x110] sm:$0xff] %v406_v47  ;;  %v427_v47 = vadd.f32 %v271_v33, %v99_v38  ;;  %v803_v33 = vld [vmem:[#allocation5 + $0x28] sm:$0xff]  ;;  %v120_v38 = vld [vmem:[#allocation2 + $0x260] sm:$0xff] }
  0x35   :  { %535 = vst [vmem:[#allocation7 + $0x118] sm:$0xff] %v407_v51  ;;  %v103_v51 = vld [vmem:[#allocation2 + $0x1d8] sm:$0xff]  ;;  %v430_v55 = vadd.f32 %v273_v45, %v102_v48  ;;  %v223_v42 = vrot.slane %v803_v33, 1  ;;  %v224_v48 = vrot.slane %v803_v33, 2  ;;  %v225_v54 = vrot.slane %v803_v33, 3 }
  0x36   :  { %536 = vst [vmem:[#allocation7 + $0x120] sm:$0xff] %v408_v53  ;;  %v429_v53 = vadd.f32 %v272_v39, %v101_v44  ;;  %v122_v44 = vld [vmem:[#allocation2 + $0x270] sm:$0xff] }
  0x37   :  { %537 = vst [vmem:[#allocation7 + $0x128] sm:$0xff] %v409_v57  ;;  %v275_v57 = vperm.slane %v215_v46, 0  ;;  %v123_v46 = vld [vmem:[#allocation2 + $0x278] sm:$0xff] }
  0x38   :  { %538 = vst [vmem:[#allocation7 + $0x130] sm:$0xff] %v410_v59  ;;  %v431_v59 = vadd.f32 %v273_v45, %v103_v51  ;;  %v448_v45 = vadd.f32 %v282_v36, %v120_v38 }
  0x39   :  { %539 = vst [vmem:[#allocation7 + $0x138] sm:$0xff] %v411_v63  ;;  %v276_v63 = vperm.slane %v793_v49, 0  ;;  %v434_v3 = vadd.f32 %v275_v57, %v106_v60  ;;  %v449_v49 = vadd.f32 %v282_v36, %v121_v40  ;;  %v226_v60 = vrot.slane %v803_v33, 4  ;;  %v141_v36 = vld [vmem:[#allocation2 + $0x308] sm:$0xff]  ;;  %v142_v40 = vld [vmem:[#allocation2 + $0x310] sm:$0xff] }
  0x3a   :  { %540 = vst [vmem:[#allocation7 + $0x140] sm:$0xff] %v412_v2  ;;  %v108_v2 = vld [vmem:[#allocation2 + $0x200] sm:$0xff] }
  0x3b   :  { %541 = vst [vmem:[#allocation7 + $0x148] sm:$0xff] %v413_v5  ;;  %v277_v5 = vperm.slane %v216_v58, 0  ;;  %v436_v9 = vadd.f32 %v276_v63, %v108_v2  ;;  %v127_v58 = vld [vmem:[#allocation2 + $0x298] sm:$0xff]  ;;  %v227_v2 = vrot.slane %v803_v33, 5 }
  0x3c   :  { %542 = vst [vmem:[#allocation7 + $0x150] sm:$0xff] %v414_v7  ;;  %v435_v7 = vadd.f32 %v275_v57, %v107_v62  ;;  %v128_v62 = vld [vmem:[#allocation2 + $0x2a0] sm:$0xff] }
  0x3d   :  { %543 = vst [vmem:[#allocation7 + $0x158] sm:$0xff] %v415_v11  ;;  %v278_v11 = vperm.slane %v217_v0, 0  ;;  %v438_v15 = vadd.f32 %v277_v5, %v110_v8  ;;  %v129_v0 = vld [vmem:[#allocation2 + $0x2a8] sm:$0xff]  ;;  %v228_v8 = vrot.slane %v803_v33, 6 }
  0x3e   :  { %544 = vst [vmem:[#allocation7 + $0x160] sm:$0xff] %v416_v13  ;;  %v437_v13 = vadd.f32 %v276_v63, %v109_v4  ;;  %v130_v4 = vld [vmem:[#allocation2 + $0x2b0] sm:$0xff] }
  0x3f   :  { %545 = vst [vmem:[#allocation7 + $0x168] sm:$0xff] %v417_v17  ;;  %v279_v17 = vperm.slane %v218_v6, 0  ;;  %v440_v21 = vadd.f32 %v278_v11, %v112_v14  ;;  %v131_v6 = vld [vmem:[#allocation2 + $0x2b8] sm:$0xff]  ;;  %v229_v14 = vrot.slane %v803_v33, 7 }
  0x40   :  { %546 = vst [vmem:[#allocation7 + $0x170] sm:$0xff] %v418_v19  ;;  %v439_v19 = vadd.f32 %v277_v5, %v111_v10  ;;  %v132_v10 = vld [vmem:[#allocation2 + $0x2c0] sm:$0xff] }
  0x41   :  { %547 = vst [vmem:[#allocation7 + $0x178] sm:$0xff] %v419_v23  ;;  %v280_v23 = vperm.slane %v219_v12, 0  ;;  %v442_v27 = vadd.f32 %v279_v17, %v114_v20  ;;  %v133_v12 = vld [vmem:[#allocation2 + $0x2c8] sm:$0xff]  ;;  %v290_v20 = vperm.slane %v228_v8, 0 }
  0x42   :  { %548 = vst [vmem:[#allocation7 + $0x180] sm:$0xff] %v420_v25  ;;  %v441_v25 = vadd.f32 %v278_v11, %v113_v16  ;;  %v134_v16 = vld [vmem:[#allocation2 + $0x2d0] sm:$0xff]  ;;  %v153_v8 = vld [vmem:[#allocation2 + $0x368] sm:$0xff] }
  0x43   :  { %549 = vst [vmem:[#allocation7 + $0x188] sm:$0xff] %v421_v29  ;;  %v281_v29 = vperm.slane %v220_v18, 0  ;;  %v444_v34 = vadd.f32 %v280_v23, %v116_v26 }
  0x44   :  { %550 = vst [vmem:[#allocation7 + $0x190] sm:$0xff] %v422_v31  ;;  %v443_v31 = vadd.f32 %v279_v17, %v115_v22  ;;  %v813_v17 = vld [vmem:[#allocation5 + $0x30] sm:$0xff]  ;;  %v136_v22 = vld [vmem:[#allocation2 + $0x2e0] sm:$0xff] }
  0x45   :  { %551 = vst [vmem:[#allocation7 + $0x198] sm:$0xff] %v423_v35  ;;  %v119_v35 = vld [vmem:[#allocation2 + $0x258] sm:$0xff]  ;;  %v446_v39 = vadd.f32 %v281_v29, %v118_v32  ;;  %v230_v26 = vrot.slane %v813_v17, 1  ;;  %v231_v32 = vrot.slane %v813_v17, 2  ;;  %v232_v38 = vrot.slane %v813_v17, 3 }
  0x46   :  { %552 = vst [vmem:[#allocation7 + $0x1a0] sm:$0xff] %v424_v37  ;;  %v445_v37 = vadd.f32 %v280_v23, %v117_v28  ;;  %v138_v28 = vld [vmem:[#allocation2 + $0x2f0] sm:$0xff] }
  0x47   :  { %553 = vst [vmem:[#allocation7 + $0x1a8] sm:$0xff] %v425_v41  ;;  %v283_v41 = vperm.slane %v222_v30, 0  ;;  %v139_v30 = vld [vmem:[#allocation2 + $0x2f8] sm:$0xff] }
  0x48   :  { %554 = vst [vmem:[#allocation7 + $0x1b0] sm:$0xff] %v426_v43  ;;  %v447_v43 = vadd.f32 %v281_v29, %v119_v35  ;;  %v464_v29 = vadd.f32 %v290_v20, %v136_v22 }
  0x49   :  { %555 = vst [vmem:[#allocation7 + $0x1b8] sm:$0xff] %v427_v47  ;;  %v284_v47 = vperm.slane %v803_v33, 0  ;;  %v450_v51 = vadd.f32 %v283_v41, %v122_v44  ;;  %v465_v33 = vadd.f32 %v290_v20, %v137_v24  ;;  %v233_v44 = vrot.slane %v813_v17, 4  ;;  %v157_v20 = vld [vmem:[#allocation2 + $0x388] sm:$0xff]  ;;  %v158_v24 = vld [vmem:[#allocation2 + $0x390] sm:$0xff] }
  0x4a   :  { %556 = vst [vmem:[#allocation7 + $0x1c0] sm:$0xff] %v428_v50  ;;  %v124_v50 = vld [vmem:[#allocation2 + $0x280] sm:$0xff] }
  0x4b   :  { %557 = vst [vmem:[#allocation7 + $0x1c8] sm:$0xff] %v429_v53  ;;  %v285_v53 = vperm.slane %v223_v42, 0  ;;  %v452_v57 = vadd.f32 %v284_v47, %v124_v50  ;;  %v143_v42 = vld [vmem:[#allocation2 + $0x318] sm:$0xff]  ;;  %v234_v50 = vrot.slane %v813_v17, 5 }
  0x4c   :  { %558 = vst [vmem:[#allocation7 + $0x1d0] sm:$0xff] %v430_v55  ;;  %v451_v55 = vadd.f32 %v283_v41, %v123_v46  ;;  %v144_v46 = vld [vmem:[#allocation2 + $0x320] sm:$0xff] }
  0x4d   :  { %559 = vst [vmem:[#allocation7 + $0x1d8] sm:$0xff] %v431_v59  ;;  %v286_v59 = vperm.slane %v224_v48, 0  ;;  %v454_v63 = vadd.f32 %v285_v53, %v126_v56  ;;  %v145_v48 = vld [vmem:[#allocation2 + $0x328] sm:$0xff]  ;;  %v235_v56 = vrot.slane %v813_v17, 6 }
  0x4e   :  { %560 = vst [vmem:[#allocation7 + $0x1e0] sm:$0xff] %v432_v61  ;;  %v453_v61 = vadd.f32 %v284_v47, %v125_v52  ;;  %v146_v52 = vld [vmem:[#allocation2 + $0x330] sm:$0xff] }
  0x4f   :  { %561 = vst [vmem:[#allocation7 + $0x1e8] sm:$0xff] %v433_v1  ;;  %v287_v1 = vperm.slane %v225_v54, 0  ;;  %v456_v5 = vadd.f32 %v286_v59, %v128_v62  ;;  %v147_v54 = vld [vmem:[#allocation2 + $0x338] sm:$0xff]  ;;  %v236_v62 = vrot.slane %v813_v17, 7 }
  0x50   :  { %562 = vst [vmem:[#allocation7 + $0x1f0] sm:$0xff] %v434_v3  ;;  %v455_v3 = vadd.f32 %v285_v53, %v127_v58  ;;  %v148_v58 = vld [vmem:[#allocation2 + $0x340] sm:$0xff] }
  0x51   :  { %563 = vst [vmem:[#allocation7 + $0x1f8] sm:$0xff] %v435_v7  ;;  %v288_v7 = vperm.slane %v226_v60, 0  ;;  %v458_v11 = vadd.f32 %v287_v1, %v130_v4  ;;  %v149_v60 = vld [vmem:[#allocation2 + $0x348] sm:$0xff]  ;;  %v298_v4 = vperm.slane %v235_v56, 0 }
  0x52   :  { %564 = vst [vmem:[#allocation7 + $0x200] sm:$0xff] %v436_v9  ;;  %v457_v9 = vadd.f32 %v286_v59, %v129_v0  ;;  %v150_v0 = vld [vmem:[#allocation2 + $0x350] sm:$0xff] }
  0x53   :  { %565 = vst [vmem:[#allocation7 + $0x208] sm:$0xff] %v437_v13  ;;  %v289_v13 = vperm.slane %v227_v2, 0  ;;  %v460_v18 = vadd.f32 %v288_v7, %v132_v10 }
  0x54   :  { %566 = vst [vmem:[#allocation7 + $0x210] sm:$0xff] %v438_v15  ;;  %v459_v15 = vadd.f32 %v287_v1, %v131_v6  ;;  %v823_v1 = vld [vmem:[#allocation5 + $0x38] sm:$0xff]  ;;  %v152_v6 = vld [vmem:[#allocation2 + $0x360] sm:$0xff] }
  0x55   :  { %567 = vst [vmem:[#allocation7 + $0x218] sm:$0xff] %v439_v19  ;;  %v135_v19 = vld [vmem:[#allocation2 + $0x2d8] sm:$0xff]  ;;  %v462_v23 = vadd.f32 %v289_v13, %v134_v16  ;;  %v237_v10 = vrot.slane %v823_v1, 1  ;;  %v238_v16 = vrot.slane %v823_v1, 2  ;;  %v239_v22 = vrot.slane %v823_v1, 3 }
  0x56   :  { %568 = vst [vmem:[#allocation7 + $0x220] sm:$0xff] %v440_v21  ;;  %v461_v21 = vadd.f32 %v288_v7, %v133_v12  ;;  %v154_v12 = vld [vmem:[#allocation2 + $0x370] sm:$0xff] }
  0x57   :  { %569 = vst [vmem:[#allocation7 + $0x228] sm:$0xff] %v441_v25  ;;  %v291_v25 = vperm.slane %v229_v14, 0  ;;  %v155_v14 = vld [vmem:[#allocation2 + $0x378] sm:$0xff] }
  0x58   :  { %570 = vst [vmem:[#allocation7 + $0x230] sm:$0xff] %v442_v27  ;;  %v463_v27 = vadd.f32 %v289_v13, %v135_v19  ;;  %v480_v13 = vadd.f32 %v298_v4, %v152_v6 }
  0x59   :  { %571 = vst [vmem:[#allocation7 + $0x238] sm:$0xff] %v443_v31  ;;  %v292_v31 = vperm.slane %v813_v17, 0  ;;  %v466_v35 = vadd.f32 %v291_v25, %v138_v28  ;;  %v481_v17 = vadd.f32 %v298_v4, %v153_v8  ;;  %v240_v28 = vrot.slane %v823_v1, 4 }
  0x5a   :  { %572 = vst [vmem:[#allocation7 + $0x240] sm:$0xff] %v444_v34  ;;  %v140_v34 = vld [vmem:[#allocation2 + $0x300] sm:$0xff] }
  0x5b   :  { %573 = vst [vmem:[#allocation7 + $0x248] sm:$0xff] %v445_v37  ;;  %v293_v37 = vperm.slane %v230_v26, 0  ;;  %v468_v41 = vadd.f32 %v292_v31, %v140_v34  ;;  %v159_v26 = vld [vmem:[#allocation2 + $0x398] sm:$0xff]  ;;  %v241_v34 = vrot.slane %v823_v1, 5 }
  0x5c   :  { %574 = vst [vmem:[#allocation7 + $0x250] sm:$0xff] %v446_v39  ;;  %v467_v39 = vadd.f32 %v291_v25, %v139_v30  ;;  %v160_v30 = vld [vmem:[#allocation2 + $0x3a0] sm:$0xff] }
  0x5d   :  { %575 = vst [vmem:[#allocation7 + $0x258] sm:$0xff] %v447_v43  ;;  %v294_v43 = vperm.slane %v231_v32, 0  ;;  %v470_v47 = vadd.f32 %v293_v37, %v142_v40  ;;  %v161_v32 = vld [vmem:[#allocation2 + $0x3a8] sm:$0xff]  ;;  %v242_v40 = vrot.slane %v823_v1, 6 }
  0x5e   :  { %576 = vst [vmem:[#allocation7 + $0x260] sm:$0xff] %v448_v45  ;;  %v469_v45 = vadd.f32 %v292_v31, %v141_v36  ;;  %v162_v36 = vld [vmem:[#allocation2 + $0x3b0] sm:$0xff] }
  0x5f   :  { %577 = vst [vmem:[#allocation7 + $0x268] sm:$0xff] %v449_v49  ;;  %v295_v49 = vperm.slane %v232_v38, 0  ;;  %v472_v53 = vadd.f32 %v294_v43, %v144_v46  ;;  %v163_v38 = vld [vmem:[#allocation2 + $0x3b8] sm:$0xff]  ;;  %v243_v46 = vrot.slane %v823_v1, 7 }
  0x60   :  { %578 = vst [vmem:[#allocation7 + $0x270] sm:$0xff] %v450_v51  ;;  %v471_v51 = vadd.f32 %v293_v37, %v143_v42  ;;  %v164_v42 = vld [vmem:[#allocation2 + $0x3c0] sm:$0xff] }
  0x61   :  { %579 = vst [vmem:[#allocation7 + $0x278] sm:$0xff] %v451_v55  ;;  %v296_v55 = vperm.slane %v233_v44, 0  ;;  %v474_v59 = vadd.f32 %v295_v49, %v146_v52  ;;  %v165_v44 = vld [vmem:[#allocation2 + $0x3c8] sm:$0xff]  ;;  %v307_v56 = vperm.slane %v243_v46, 0 }
  0x62   :  { %580 = vst [vmem:[#allocation7 + $0x280] sm:$0xff] %v452_v57  ;;  %v473_v57 = vadd.f32 %v294_v43, %v145_v48  ;;  %v166_v48 = vld [vmem:[#allocation2 + $0x3d0] sm:$0xff] }
  0x63   :  { %581 = vst [vmem:[#allocation7 + $0x288] sm:$0xff] %v453_v61  ;;  %v297_v61 = vperm.slane %v234_v50, 0  ;;  %v476_v2 = vadd.f32 %v296_v55, %v148_v58  ;;  %v167_v50 = vld [vmem:[#allocation2 + $0x3d8] sm:$0xff]  ;;  %v170_v58 = vld [vmem:[#allocation2 + $0x3f0] sm:$0xff] }
  0x64   :  { %582 = vst [vmem:[#allocation7 + $0x290] sm:$0xff] %v454_v63  ;;  %v475_v63 = vadd.f32 %v295_v49, %v147_v54 }
  0x65   :  { %583 = vst [vmem:[#allocation7 + $0x298] sm:$0xff] %v455_v3  ;;  %v151_v3 = vld [vmem:[#allocation2 + $0x358] sm:$0xff]  ;;  %v478_v7 = vadd.f32 %v297_v61, %v150_v0 }
  0x66   :  { %584 = vst [vmem:[#allocation7 + $0x2a0] sm:$0xff] %v456_v5  ;;  %v477_v5 = vadd.f32 %v296_v55, %v149_v60  ;;  %v169_v55 = vld [vmem:[#allocation2 + $0x3e8] sm:$0xff]  ;;  %v171_v60 = vld [vmem:[#allocation2 + $0x3f8] sm:$0xff] }
  0x67   :  { %585 = vst [vmem:[#allocation7 + $0x2a8] sm:$0xff] %v457_v9  ;;  %v299_v9 = vperm.slane %v236_v62, 0  ;;  %v498_v62 = vadd.f32 %v307_v56, %v170_v58 }
  0x68   :  { %586 = vst [vmem:[#allocation7 + $0x2b0] sm:$0xff] %v458_v11  ;;  %v479_v11 = vadd.f32 %v297_v61, %v151_v3 }
  0x69   :  { %587 = vst [vmem:[#allocation7 + $0x2b8] sm:$0xff] %v459_v15  ;;  %v300_v15 = vperm.slane %v823_v1, 0  ;;  %v482_v19 = vadd.f32 %v299_v9, %v154_v12 }
  0x6a   :  { %588 = vst [vmem:[#allocation7 + $0x2c0] sm:$0xff] %v460_v18  ;;  %v156_v18 = vld [vmem:[#allocation2 + $0x380] sm:$0xff] }
  0x6b   :  { %589 = vst [vmem:[#allocation7 + $0x2c8] sm:$0xff] %v461_v21  ;;  %v301_v21 = vperm.slane %v237_v10, 0  ;;  %v484_v25 = vadd.f32 %v300_v15, %v156_v18 }
  0x6c   :  { %590 = vst [vmem:[#allocation7 + $0x2d0] sm:$0xff] %v462_v23  ;;  %v483_v23 = vadd.f32 %v299_v9, %v155_v14 }
  0x6d   :  { %591 = vst [vmem:[#allocation7 + $0x2d8] sm:$0xff] %v463_v27  ;;  %v302_v27 = vperm.slane %v238_v16, 0  ;;  %v486_v31 = vadd.f32 %v301_v21, %v158_v24 }
  0x6e   :  { %592 = vst [vmem:[#allocation7 + $0x2e0] sm:$0xff] %v464_v29  ;;  %v485_v29 = vadd.f32 %v300_v15, %v157_v20 }
  0x6f   :  { %593 = vst [vmem:[#allocation7 + $0x2e8] sm:$0xff] %v465_v33  ;;  %v303_v33 = vperm.slane %v239_v22, 0  ;;  %v488_v37 = vadd.f32 %v302_v27, %v160_v30 }
  0x70   :  { %594 = vst [vmem:[#allocation7 + $0x2f0] sm:$0xff] %v466_v35  ;;  %v487_v35 = vadd.f32 %v301_v21, %v159_v26 }
  0x71   :  { %595 = vst [vmem:[#allocation7 + $0x2f8] sm:$0xff] %v467_v39  ;;  %v304_v39 = vperm.slane %v240_v28, 0  ;;  %v490_v43 = vadd.f32 %v303_v33, %v162_v36 }
  0x72   :  { %596 = vst [vmem:[#allocation7 + $0x300] sm:$0xff] %v468_v41  ;;  %v489_v41 = vadd.f32 %v302_v27, %v161_v32 }
  0x73   :  { %597 = vst [vmem:[#allocation7 + $0x308] sm:$0xff] %v469_v45  ;;  %v305_v45 = vperm.slane %v241_v34, 0  ;;  %v492_v49 = vadd.f32 %v304_v39, %v164_v42  ;;  %v493_v52 = vadd.f32 %v304_v39, %v165_v44 }
  0x74   :  { %598 = vst [vmem:[#allocation7 + $0x310] sm:$0xff] %v470_v47  ;;  %v491_v47 = vadd.f32 %v303_v33, %v163_v38 }
  0x75   :  { %599 = vst [vmem:[#allocation7 + $0x318] sm:$0xff] %v471_v51  ;;  %v306_v51 = vperm.slane %v242_v40, 0  ;;  %v494_v54 = vadd.f32 %v305_v45, %v166_v48 }
  0x76   :  { %600 = vst [vmem:[#allocation7 + $0x320] sm:$0xff] %v472_v53  ;;  %v168_v53 = vld [vmem:[#allocation2 + $0x3e0] sm:$0xff] }
  0x77   :  { %601 = vst [vmem:[#allocation7 + $0x328] sm:$0xff] %v473_v57  ;;  %v495_v57 = vadd.f32 %v305_v45, %v167_v50  ;;  %v497_v61 = vadd.f32 %v306_v51, %v169_v55 }
  0x78   :  { %602 = vst [vmem:[#allocation7 + $0x330] sm:$0xff] %v474_v59  ;;  %v496_v59 = vadd.f32 %v306_v51, %v168_v53 }
  0x79   :  { %603 = vst [vmem:[#allocation7 + $0x338] sm:$0xff] %v475_v63  ;;  %v499_v63 = vadd.f32 %v307_v56, %v171_v60 }
  0x7a   :  { %604 = vst [vmem:[#allocation7 + $0x340] sm:$0xff] %v476_v2 }
  0x7b   :  { %605 = vst [vmem:[#allocation7 + $0x348] sm:$0xff] %v477_v5 }
  0x7c   :  { %606 = vst [vmem:[#allocation7 + $0x350] sm:$0xff] %v478_v7 }
  0x7d   :  { %607 = vst [vmem:[#allocation7 + $0x358] sm:$0xff] %v479_v11 }
  0x7e   :  { %608 = vst [vmem:[#allocation7 + $0x360] sm:$0xff] %v480_v13 }
  0x7f   :  { %609 = vst [vmem:[#allocation7 + $0x368] sm:$0xff] %v481_v17 }
  0x80   :  { %610 = vst [vmem:[#allocation7 + $0x370] sm:$0xff] %v482_v19 }
  0x81   :  { %611 = vst [vmem:[#allocation7 + $0x378] sm:$0xff] %v483_v23 }
  0x82   :  { %612 = vst [vmem:[#allocation7 + $0x380] sm:$0xff] %v484_v25 }
  0x83   :  { %613 = vst [vmem:[#allocation7 + $0x388] sm:$0xff] %v485_v29 }
  0x84   :  { %614 = vst [vmem:[#allocation7 + $0x390] sm:$0xff] %v486_v31 }
  0x85   :  { %615 = vst [vmem:[#allocation7 + $0x398] sm:$0xff] %v487_v35 }
  0x86   :  { %616 = vst [vmem:[#allocation7 + $0x3a0] sm:$0xff] %v488_v37 }
  0x87   :  { %617 = vst [vmem:[#allocation7 + $0x3a8] sm:$0xff] %v489_v41 }
  0x88   :  { %618 = vst [vmem:[#allocation7 + $0x3b0] sm:$0xff] %v490_v43 }
  0x89   :  { %619 = vst [vmem:[#allocation7 + $0x3b8] sm:$0xff] %v491_v47 }
  0x8a   :  { %620 = vst [vmem:[#allocation7 + $0x3c0] sm:$0xff] %v492_v49 }
  0x8b   :  { %621 = vst [vmem:[#allocation7 + $0x3c8] sm:$0xff] %v493_v52 }
  0x8c   :  { %622 = vst [vmem:[#allocation7 + $0x3d0] sm:$0xff] %v494_v54 }
  0x8d   :  { %623 = vst [vmem:[#allocation7 + $0x3d8] sm:$0xff] %v495_v57 }
  0x8e   :  { %624 = vst [vmem:[#allocation7 + $0x3e0] sm:$0xff] %v496_v59 }
  0x8f   :  { %625 = vst [vmem:[#allocation7 + $0x3e8] sm:$0xff] %v497_v61 }
  0x90   :  { %626 = vst [vmem:[#allocation7 + $0x3f0] sm:$0xff] %v498_v62 }
  0x91   :  { %627 = vst [vmem:[#allocation7 + $0x3f8] sm:$0xff] %v499_v63 }
  0x92   :  { %640 = dma.vmem_to_hbm [thread:$0]  %s633_s1, 16384, %s635_s23, [#allocation4], %s732_s17, %s732_s17, %s733_s18  }
  0x93   :  { %729 = dma.done.wait [#allocation4], 16384  }
  0x94   :  { %730 = vsyncadd [#allocation4], 4294950912 }
  0x95   :  { %645 = vsyncpa [#allocation3], 1 }
  0x96   :  { %646 = vsyncpa [#allocation6], 1 }
  0x97   :  { %647 = vsyncpa [#allocation4], 1 }

</bundles_post_ra>
